<compile_context>
chip_gen: v6e
topology: v6e:2x2x1
jax: 0.10.0
libtpu: 0.0.40
codegen_flags: <defaults>
</compile_context>

<pallas_src>
import functools

import jax
import jax.numpy as jnp
import numpy as np
from jax.experimental import pallas as pl
from jax.experimental.pallas import tpu as pltpu


def _resblock_kernel(xf_ref, m1_ref, b1_ref, m2_ref, b2_ref, *rest,
                     TH, res_scale, with_res):
    # xf_ref : (N, H+8, WCp) in HBM (memory_space=pl.ANY); row i <-> image row i-2
    # m*_ref : (3, WCp, WCp) VMEM-resident banded conv matrices (per kernel row)
    # b*_ref : (1, WCp)      VMEM-resident lane-folded biases (f32)
    # o_ref  : (1, TH, WCp)  out = x + res_scale * conv2(relu(conv1(x)))
    # r_ref  : (1, TH, WCp)  res (only when with_res)
    # buf    : (2, TH+8, WCp) double-buffered input windows
    # sem    : (2,) DMA semaphores
    if with_res:
        o_ref, r_ref, buf_ref, sem_ref = rest
    else:
        o_ref, buf_ref, sem_ref = rest
        r_ref = None

    n = pl.program_id(0)
    h = pl.program_id(1)
    nh = pl.num_programs(1)
    R = TH + 8
    f32 = jnp.float32

    def window(hh):
        start = hh * TH
        if TH % 8 == 0:
            start = pl.multiple_of(start, 8)
        return xf_ref.at[n, pl.ds(start, R), :]

    slot = h % 2

    # Prime: fetch this image's first window.
    @pl.when(h == 0)
    def _():
        pltpu.make_async_copy(window(0), buf_ref.at[0], sem_ref.at[0]).start()

    # Prefetch the next overlapping window of the same image (h axis is
    # sequential per core, so this chain is safe under megacore n-sharding).
    @pl.when(h + 1 < nh)
    def _():
        pltpu.make_async_copy(window(h + 1), buf_ref.at[1 - slot],
                              sem_ref.at[1 - slot]).start()

    pltpu.make_async_copy(window(h), buf_ref.at[slot], sem_ref.at[slot]).wait()

    xwin = buf_ref[slot]                     # (R, WCp), input dtype
    cdt = m1_ref.dtype

    # Shifted conv-row taps via sublane rotate (XLU): xk[i] = xwin[i + k].
    x0 = xwin
    x1 = pltpu.roll(xwin, shift=R - 1, axis=0)
    x2 = pltpu.roll(xwin, shift=R - 2, axis=0)

    # ---- conv1 + bias + ReLU (rows 0..TH+1 are the meaningful ones) --------
    y = (jnp.dot(x0.astype(cdt), m1_ref[0], preferred_element_type=f32)
         + jnp.dot(x1.astype(cdt), m1_ref[1], preferred_element_type=f32)
         + jnp.dot(x2.astype(cdt), m1_ref[2], preferred_element_type=f32))
    y = jnp.maximum(y + b1_ref[...].astype(f32), 0.0)

    # Reflect-in-H of the intermediate activation at the true image top /
    # bottom: y[0] := y[2] when h == 0, y[TH+1] := y[TH-1] when h == nh-1.
    # (Interior tiles already hold the real neighbour rows from the halo.)
    row = jax.lax.broadcasted_iota(jnp.int32, y.shape, 0)
    y_dn2 = pltpu.roll(y, shift=R - 2, axis=0)           # y_dn2[i] = y[i + 2]
    y_up2 = pltpu.roll(y, shift=2, axis=0)                # y_up2[i] = y[i - 2]
    y = jnp.where(jnp.logical_and(row == 0, h == 0), y_dn2, y)
    y = jnp.where(jnp.logical_and(row == TH + 1, h == nh - 1), y_up2, y)

    # ---- conv2 + bias, residual scale ---------------------------------------
    yc = y.astype(cdt)
    y1s = pltpu.roll(yc, shift=R - 1, axis=0)
    y2s = pltpu.roll(yc, shift=R - 2, axis=0)
    res = (jnp.dot(yc, m2_ref[0], preferred_element_type=f32)
           + jnp.dot(y1s, m2_ref[1], preferred_element_type=f32)
           + jnp.dot(y2s, m2_ref[2], preferred_element_type=f32))
    res = (res + b2_ref[...].astype(f32)) * res_scale

    res = res[0:TH, :]                       # valid output rows (aligned slice)
    x_res = x2[0:TH, :].astype(f32)          # residual = this tile's image rows
    o_ref[0] = (x_res + res).astype(o_ref.dtype)
    if with_res:
        r_ref[0] = res.astype(r_ref.dtype)


def _fold_conv_weights(w_oihw, W, WCp, dtype):
    """Fold a 3x3 conv (incl. its width reflect-pad) into three banded
    (WCp, WCp) matrices, one per kernel row, for the lane-folded layout:

      out[:, wo*C + co] = sum_dy  x_row_slab(dy) @ M[dy]
      M[dy][wi*C + ci, wo*C + co] = sum_{dx: reflect_W(wo+dx-1) == wi} w[co,ci,dy,dx]
    """
    c_out, c_in, kh, kw = w_oihw.shape
    assert kh == 3 and kw == 3
    w_hwio = jnp.transpose(w_oihw, (2, 3, 1, 0)).astype(jnp.float32)
    wc_in, wc_out = W * c_in, W * c_out
    mats = []
    for dy in range(3):
        m = jnp.zeros((wc_in, wc_out), jnp.float32)
        for dx in range(3):
            sel = np.zeros((W, W), dtype=np.float32)
            for wo in range(W):
                wi = wo + dx - 1
                if wi < 0:
                    wi = -wi                          # reflect: -1 -> 1
                elif wi >= W:
                    wi = 2 * (W - 1) - wi             # reflect:  W -> W-2
                sel[wi, wo] += 1.0
            m = m + jnp.kron(jnp.asarray(sel), w_hwio[dy, dx])
        m = jnp.pad(m, ((0, WCp - wc_in), (0, WCp - wc_out)))
        mats.append(m)
    return jnp.stack(mats, axis=0).astype(dtype)        # [3, WCp, WCp]


def _vmem_bytes(th, WCp, n_outs, x_itemsize, w_itemsize):
    weights = 6 * WCp * WCp * w_itemsize + 2 * WCp * 4
    in_buf = 2 * (th + 8) * WCp * x_itemsize            # manual double-buffer
    out_buf = n_outs * 2 * th * WCp * x_itemsize        # auto-pipelined outputs
    temps = 8 * (th + 8) * WCp * 4                      # in-kernel f32 values
    return weights + in_buf + out_buf + temps


def _pick_tile_h(H, WCp, n_outs, x_itemsize, w_itemsize, budget,
                 max_tile_h=None):
    """Prefer the whole image as one row tile; fall back to the largest
    multiple-of-8 divisor of H that fits the VMEM budget."""
    cands = [H] + [t for t in range(((H - 1) // 8) * 8, 0, -8) if H % t == 0]
    if max_tile_h is not None:
        filt = [t for t in cands if t <= max_tile_h]
        cands = filt or [cands[-1]]
    for th in cands:
        if _vmem_bytes(th, WCp, n_outs, x_itemsize, w_itemsize) <= budget:
            return th
    # TODO(synk): remainder-tile masking so H with no small multiple-of-8
    # divisor does not force an oversized whole-image tile.
    return cands[-1]


def resblock_pallas(x_nchw, w1_oihw, b1, w2_oihw, b2, res_scale=1.0,
                    res_out=False, compute_dtype=None, max_tile_h=None):
    """Forward of ResBlock. x_nchw: [N, C, H, W] (PyTorch convention)."""
    N, C, H, W = x_nchw.shape
    assert H >= 2 and W >= 2, "reflect padding needs H, W >= 2"
    WC = W * C
    WCp = ((WC + 127) // 128) * 128                     # lane-dense width
    wdt = jnp.dtype(compute_dtype) if compute_dtype is not None else x_nchw.dtype
    n_outs = 2 if res_out else 1
    x_isz = jnp.dtype(x_nchw.dtype).itemsize
    w_isz = jnp.dtype(wdt).itemsize
    TH = _pick_tile_h(H, WCp, n_outs, x_isz, w_isz, budget=24 * 2**20,
                      max_tile_h=max_tile_h)
    nh = H // TH

    # ---- glue: NCHW -> lane-folded (N, H+8, WCp) with H reflect rows --------
    x_nhwc = jnp.transpose(x_nchw, (0, 2, 3, 1))                 # [N, H, W, C]
    if H >= 3:
        xp = jnp.pad(x_nhwc, ((0, 0), (2, 2), (0, 0), (0, 0)), mode="reflect")
    else:
        xp = jnp.pad(x_nhwc, ((0, 0), (1, 1), (0, 0), (0, 0)), mode="reflect")
        xp = jnp.pad(xp, ((0, 0), (1, 1), (0, 0), (0, 0)), mode="edge")
    # Rows -2 / H+1 only feed the two y rows that the in-kernel reflect fix
    # overwrites; 4 extra zero rows keep every (TH+8)-row DMA window in range.
    xp = jnp.pad(xp, ((0, 0), (0, 4), (0, 0), (0, 0)))
    xf = xp.reshape(N, H + 8, WC)
    if WCp > WC:
        xf = jnp.pad(xf, ((0, 0), (0, 0), (0, WCp - WC)))

    # ---- weights / biases folded (and lane-padded) in the wrapper -----------
    m1 = _fold_conv_weights(w1_oihw, W, WCp, wdt)                # [3, WCp, WCp]
    m2 = _fold_conv_weights(w2_oihw, W, WCp, wdt)
    b1f = jnp.pad(jnp.tile(b1.astype(jnp.float32), W), (0, WCp - WC)).reshape(1, WCp)
    b2f = jnp.pad(jnp.tile(b2.astype(jnp.float32), W), (0, WCp - WC)).reshape(1, WCp)

    kernel = functools.partial(_resblock_kernel, TH=TH,
                               res_scale=float(res_scale),
                               with_res=bool(res_out))

    out_block = pl.BlockSpec((1, TH, WCp), lambda n, h: (n, h, 0))
    out_sds = jax.ShapeDtypeStruct((N, H, WCp), x_nchw.dtype)
    out_shape = (out_sds, out_sds) if res_out else out_sds
    out_specs = (out_block, out_block) if res_out else out_block

    vmem_est = _vmem_bytes(TH, WCp, n_outs, x_isz, w_isz)
    vmem_limit = int(min(48 * 2**20, max(16 * 2**20, 2 * vmem_est)))

    vmem_resident = pl.BlockSpec(memory_space=pltpu.MemorySpace.VMEM)

    outs = pl.pallas_call(
        kernel,
        out_shape=out_shape,
        grid_spec=pltpu.PrefetchScalarGridSpec(
            num_scalar_prefetch=0,
            grid=(N, nh),
            in_specs=[
                pl.BlockSpec(memory_space=pl.ANY),   # xf stays in HBM
                vmem_resident,                       # m1 (single VMEM copy)
                vmem_resident,                       # b1
                vmem_resident,                       # m2
                vmem_resident,                       # b2
            ],
            out_specs=out_specs,
            scratch_shapes=[
                pltpu.VMEM((2, TH + 8, WCp), x_nchw.dtype),   # window buffers
                pltpu.SemaphoreType.DMA((2,)),
            ]),
        compiler_params=pltpu.CompilerParams(
            dimension_semantics=("parallel", "arbitrary"),
            vmem_limit_bytes=vmem_limit),
    )(xf, m1, b1f, m2, b2f)

    def to_nchw(a):
        return jnp.transpose(a[..., :WC].reshape(N, H, W, C), (0, 3, 1, 2))

    if res_out:
        return to_nchw(outs[0]), to_nchw(outs[1])
    return to_nchw(outs)


def _reference(x_nchw, w1_oihw, b1, w2_oihw, b2, res_scale):
    """Pure-JAX reference (NHWC conv via lax.conv_general_dilated)."""
    x = jnp.transpose(x_nchw, (0, 2, 3, 1))
    dn = ("NHWC", "HWIO", "NHWC")

    def conv(inp, w_oihw, b):
        inp_p = jnp.pad(inp, ((0, 0), (1, 1), (1, 1), (0, 0)), mode="reflect")
        w = jnp.transpose(w_oihw, (2, 3, 1, 0))
        y = jax.lax.conv_general_dilated(inp_p, w, (1, 1), "VALID",
                                         dimension_numbers=dn)
        return y + b

    y = jnp.maximum(conv(x, w1_oihw, b1), 0.0)
    res = res_scale * conv(y, w2_oihw, b2)
    out = x + res
    return (jnp.transpose(out, (0, 3, 1, 2)),
            jnp.transpose(res, (0, 3, 1, 2)))


if __name__ == "__main__":
    N, C, H, W = 2, 4, 16, 16
    res_scale = 0.5

    key = jax.random.PRNGKey(0)
    kx, kw1, kb1, kw2, kb2, kx2 = jax.random.split(key, 6)

    x = jax.random.normal(kx, (N, C, H, W), jnp.float32)
    # nn.Conv2d(num_channels, num_channels, 3): weight [C_out, C_in, 3, 3]
    fan_in = C * 3 * 3
    bound = 1.0 / (fan_in ** 0.5)
    w1 = jax.random.uniform(kw1, (C, C, 3, 3), jnp.float32, -bound, bound)
    b1 = jax.random.uniform(kb1, (C,), jnp.float32, -bound, bound)
    w2 = jax.random.uniform(kw2, (C, C, 3, 3), jnp.float32, -bound, bound)
    b2 = jax.random.uniform(kb2, (C,), jnp.float32, -bound, bound)

    ref_out, ref_res = _reference(x, w1, b1, w2, b2, res_scale)

    # Default path: whole image as a single row tile per batch element.
    out = resblock_pallas(x, w1, b1, w2, b2, res_scale=res_scale)
    out = jax.block_until_ready(out)
    assert out.shape == (N, C, H, W)
    assert jnp.allclose(out, ref_out, atol=2e-5, rtol=2e-5)

    # res_out=True: residual returned straight from the kernel.
    out2, res2 = resblock_pallas(x, w1, b1, w2, b2, res_scale=res_scale,
                                 res_out=True)
    jax.block_until_ready((out2, res2))
    assert jnp.allclose(out2, ref_out, atol=2e-5, rtol=2e-5)
    assert jnp.allclose(res2, ref_res, atol=2e-5, rtol=2e-5)

    # Taller single-batch image.
    H2 = 24
    x2 = jax.random.normal(kx2, (1, C, H2, W), jnp.float32)
    ref3, _ = _reference(x2, w1, b1, w2, b2, res_scale)
    out3 = jax.block_until_ready(
        resblock_pallas(x2, w1, b1, w2, b2, res_scale=res_scale))
    assert jnp.allclose(out3, ref3, atol=2e-5, rtol=2e-5)

    # Force row tiling (3 tiles of 8 rows) to exercise the halo DMA, the
    # h-prefetch chain, and the top / interior / bottom reflect-fix paths.
    out4 = jax.block_until_ready(
        resblock_pallas(x2, w1, b1, w2, b2, res_scale=res_scale, max_tile_h=8))
    assert jnp.allclose(out4, ref3, atol=2e-5, rtol=2e-5)

    print("KERNEL_OK")
</pallas_src>

<mosaic_0001>
module attributes {stable_mosaic.version = 11 : i64} {
  func.func @_resblock_kernel(%arg0: i32, %arg1: i32, %arg2: memref<2x24x128xf32, #tpu.memory_space<any>>, %arg3: memref<3x128x128xf32, #tpu.memory_space<vmem>>, %arg4: memref<1x128xf32, #tpu.memory_space<vmem>>, %arg5: memref<3x128x128xf32, #tpu.memory_space<vmem>>, %arg6: memref<1x128xf32, #tpu.memory_space<vmem>>, %arg7: memref<1x16x128xf32, #tpu.memory_space<vmem>>, %arg8: memref<2x24x128xf32, #tpu.memory_space<vmem>>, %arg9: memref<2x!tpu.dma_semaphore, #tpu.memory_space<semaphore_mem>>) attributes {dimension_semantics = [#tpu.dimension_semantics<parallel>, #tpu.dimension_semantics<arbitrary>], iteration_bounds = array<i64: 2, 1>, scalar_prefetch = 0 : i64, scratch_operands = 2 : i64, tpu.core_type = #tpu.core_type<tc>, window_params = [{}, {pipeline_mode = #tpu.pipeline_mode<synchronous>, transform_indices = @transform_1, window_bounds = array<i64: 3, 128, 128>}, {pipeline_mode = #tpu.pipeline_mode<synchronous>, transform_indices = @transform_2, window_bounds = array<i64: 1, 128>}, {pipeline_mode = #tpu.pipeline_mode<synchronous>, transform_indices = @transform_3, window_bounds = array<i64: 3, 128, 128>}, {pipeline_mode = #tpu.pipeline_mode<synchronous>, transform_indices = @transform_4, window_bounds = array<i64: 1, 128>}, {transform_indices = @transform_5, window_bounds = array<i64: 1, 16, 128>}]} {
    %c2_i32 = arith.constant 2 : i32
    %c0_i32 = arith.constant 0 : i32
    %0 = arith.cmpi eq, %c2_i32, %c0_i32 : i32
    %c1_i32 = arith.constant 1 : i32
    %1 = arith.select %0, %c1_i32, %c2_i32 : i32
    %2 = arith.remsi %arg1, %1 : i32
    %c0_i32_0 = arith.constant 0 : i32
    %3 = arith.cmpi ne, %2, %c0_i32_0 : i32
    %c0_i32_1 = arith.constant 0 : i32
    %4 = arith.cmpi slt, %2, %c0_i32_1 : i32
    %c0_i32_2 = arith.constant 0 : i32
    %5 = arith.cmpi slt, %1, %c0_i32_2 : i32
    %6 = arith.xori %4, %5 : i1
    %7 = arith.andi %6, %3 : i1
    %8 = arith.addi %2, %1 : i32
    %9 = arith.select %7, %8, %2 : i32
    %c0_i32_3 = arith.constant 0 : i32
    %10 = arith.cmpi eq, %arg1, %c0_i32_3 : i32
    %11 = arith.extui %10 : i1 to i32
    %c0_i32_4 = arith.constant 0 : i32
    %12 = arith.cmpi ne, %11, %c0_i32_4 : i32
    scf.if %12 {
      %c0_i32_49 = arith.constant 0 : i32
      %85 = tpu.assume_multiple %c0_i32_49, 8 : i32
      %c0_i32_50 = arith.constant 0 : i32
      %c0_i32_51 = arith.constant 0 : i32
      %c0_i32_52 = arith.constant 0 : i32
      %86 = tpu.memref_slice %arg2[%arg0, %85, %c0_i32_52] : memref<2x24x128xf32, #tpu.memory_space<any>> -> memref<1x24x128xf32, #tpu.memory_space<any>>
      %87 = tpu.memref_squeeze %86 : memref<1x24x128xf32, #tpu.memory_space<any>> -> memref<24x128xf32, #tpu.memory_space<any>>
      %c0_i32_53 = arith.constant 0 : i32
      %c0_i32_54 = arith.constant 0 : i32
      %88 = tpu.memref_slice %arg8[%c0_i32_50, %c0_i32_53, %c0_i32_54] : memref<2x24x128xf32, #tpu.memory_space<vmem>> -> memref<1x24x128xf32, #tpu.memory_space<vmem>>
      %89 = tpu.memref_squeeze %88 : memref<1x24x128xf32, #tpu.memory_space<vmem>> -> memref<24x128xf32, #tpu.memory_space<vmem>>
      %90 = tpu.memref_slice %arg9[%c0_i32_51] : memref<2x!tpu.dma_semaphore, #tpu.memory_space<semaphore_mem>> -> memref<1x!tpu.dma_semaphore, #tpu.memory_space<semaphore_mem>>
      %91 = tpu.memref_squeeze %90 : memref<1x!tpu.dma_semaphore, #tpu.memory_space<semaphore_mem>> -> memref<!tpu.dma_semaphore, #tpu.memory_space<semaphore_mem>>
      tpu.enqueue_dma source(%87 : memref<24x128xf32, #tpu.memory_space<any>>) target(%89 : memref<24x128xf32, #tpu.memory_space<vmem>>) target_semaphore(%91 : memref<!tpu.dma_semaphore, #tpu.memory_space<semaphore_mem>>)
    } else {
    }
    %c1_i32_5 = arith.constant 1 : i32
    %13 = arith.addi %arg1, %c1_i32_5 : i32
    %c1_i32_6 = arith.constant 1 : i32
    %14 = arith.cmpi slt, %13, %c1_i32_6 : i32
    %15 = arith.extui %14 : i1 to i32
    %c0_i32_7 = arith.constant 0 : i32
    %16 = arith.cmpi ne, %15, %c0_i32_7 : i32
    scf.if %16 {
      %c1_i32_49 = arith.constant 1 : i32
      %85 = arith.addi %arg1, %c1_i32_49 : i32
      %c16_i32_50 = arith.constant 16 : i32
      %86 = arith.muli %85, %c16_i32_50 : i32
      %87 = tpu.assume_multiple %86, 8 : i32
      %c1_i32_51 = arith.constant 1 : i32
      %88 = arith.subi %c1_i32_51, %9 : i32
      %c1_i32_52 = arith.constant 1 : i32
      %89 = arith.subi %c1_i32_52, %9 : i32
      %c0_i32_53 = arith.constant 0 : i32
      %90 = tpu.memref_slice %arg2[%arg0, %87, %c0_i32_53] : memref<2x24x128xf32, #tpu.memory_space<any>> -> memref<1x24x128xf32, #tpu.memory_space<any>>
      %91 = tpu.memref_squeeze %90 : memref<1x24x128xf32, #tpu.memory_space<any>> -> memref<24x128xf32, #tpu.memory_space<any>>
      %c0_i32_54 = arith.constant 0 : i32
      %c0_i32_55 = arith.constant 0 : i32
      %92 = tpu.memref_slice %arg8[%88, %c0_i32_54, %c0_i32_55] : memref<2x24x128xf32, #tpu.memory_space<vmem>> -> memref<1x24x128xf32, #tpu.memory_space<vmem>>
      %93 = tpu.memref_squeeze %92 : memref<1x24x128xf32, #tpu.memory_space<vmem>> -> memref<24x128xf32, #tpu.memory_space<vmem>>
      %94 = tpu.memref_slice %arg9[%89] : memref<2x!tpu.dma_semaphore, #tpu.memory_space<semaphore_mem>> -> memref<1x!tpu.dma_semaphore, #tpu.memory_space<semaphore_mem>>
      %95 = tpu.memref_squeeze %94 : memref<1x!tpu.dma_semaphore, #tpu.memory_space<semaphore_mem>> -> memref<!tpu.dma_semaphore, #tpu.memory_space<semaphore_mem>>
      tpu.enqueue_dma source(%91 : memref<24x128xf32, #tpu.memory_space<any>>) target(%93 : memref<24x128xf32, #tpu.memory_space<vmem>>) target_semaphore(%95 : memref<!tpu.dma_semaphore, #tpu.memory_space<semaphore_mem>>)
    } else {
    }
    %c16_i32 = arith.constant 16 : i32
    %17 = arith.muli %arg1, %c16_i32 : i32
    %18 = tpu.assume_multiple %17, 8 : i32
    %c0_i32_8 = arith.constant 0 : i32
    %19 = tpu.memref_slice %arg2[%arg0, %18, %c0_i32_8] : memref<2x24x128xf32, #tpu.memory_space<any>> -> memref<1x24x128xf32, #tpu.memory_space<any>>
    %20 = tpu.memref_squeeze %19 : memref<1x24x128xf32, #tpu.memory_space<any>> -> memref<24x128xf32, #tpu.memory_space<any>>
    %c0_i32_9 = arith.constant 0 : i32
    %c0_i32_10 = arith.constant 0 : i32
    %21 = tpu.memref_slice %arg8[%9, %c0_i32_9, %c0_i32_10] : memref<2x24x128xf32, #tpu.memory_space<vmem>> -> memref<1x24x128xf32, #tpu.memory_space<vmem>>
    %22 = tpu.memref_squeeze %21 : memref<1x24x128xf32, #tpu.memory_space<vmem>> -> memref<24x128xf32, #tpu.memory_space<vmem>>
    %23 = tpu.memref_slice %arg9[%9] : memref<2x!tpu.dma_semaphore, #tpu.memory_space<semaphore_mem>> -> memref<1x!tpu.dma_semaphore, #tpu.memory_space<semaphore_mem>>
    %24 = tpu.memref_squeeze %23 : memref<1x!tpu.dma_semaphore, #tpu.memory_space<semaphore_mem>> -> memref<!tpu.dma_semaphore, #tpu.memory_space<semaphore_mem>>
    tpu.wait_dma2 semaphore(%24 : memref<!tpu.dma_semaphore, #tpu.memory_space<semaphore_mem>>) src(%20 : memref<24x128xf32, #tpu.memory_space<any>>) dst(%22 : memref<24x128xf32, #tpu.memory_space<vmem>>)
    %25 = arith.index_cast %9 : i32 to index
    %c0 = arith.constant 0 : index
    %c0_11 = arith.constant 0 : index
    %26 = vector.load %arg8[%25, %c0, %c0_11] : memref<2x24x128xf32, #tpu.memory_space<vmem>>, vector<1x24x128xf32>
    %27 = vector.shape_cast %26 : vector<1x24x128xf32> to vector<24x128xf32>
    %c23_i32 = arith.constant 23 : i32
    %28 = tpu.dynamic_rotate %27 by %c23_i32 dim 0 : vector<24x128xf32>, i32 -> vector<24x128xf32>
    %c22_i32 = arith.constant 22 : i32
    %29 = tpu.dynamic_rotate %27 by %c22_i32 dim 0 : vector<24x128xf32>, i32 -> vector<24x128xf32>
    %c0_12 = arith.constant 0 : index
    %c0_13 = arith.constant 0 : index
    %c0_14 = arith.constant 0 : index
    %30 = vector.load %arg3[%c0_12, %c0_13, %c0_14] : memref<3x128x128xf32, #tpu.memory_space<vmem>>, vector<1x128x128xf32>
    %31 = vector.shape_cast %30 : vector<1x128x128xf32> to vector<128x128xf32>
    %cst = arith.constant dense<0.000000e+00> : vector<24x128xf32>
    %32 = tpu.matmul %27, %31, %cst {dimension_numbers = #tpu.dot_dimension_numbers<[1], [0], [0], [1], [0, 0, 1, 1], [], []>} : vector<24x128xf32>, vector<128x128xf32>, vector<24x128xf32> -> vector<24x128xf32>
    %c1 = arith.constant 1 : index
    %c0_15 = arith.constant 0 : index
    %c0_16 = arith.constant 0 : index
    %33 = vector.load %arg3[%c1, %c0_15, %c0_16] : memref<3x128x128xf32, #tpu.memory_space<vmem>>, vector<1x128x128xf32>
    %34 = vector.shape_cast %33 : vector<1x128x128xf32> to vector<128x128xf32>
    %cst_17 = arith.constant dense<0.000000e+00> : vector<24x128xf32>
    %35 = tpu.matmul %28, %34, %cst_17 {dimension_numbers = #tpu.dot_dimension_numbers<[1], [0], [0], [1], [0, 0, 1, 1], [], []>} : vector<24x128xf32>, vector<128x128xf32>, vector<24x128xf32> -> vector<24x128xf32>
    %36 = arith.addf %32, %35 : vector<24x128xf32>
    %c2 = arith.constant 2 : index
    %c0_18 = arith.constant 0 : index
    %c0_19 = arith.constant 0 : index
    %37 = vector.load %arg3[%c2, %c0_18, %c0_19] : memref<3x128x128xf32, #tpu.memory_space<vmem>>, vector<1x128x128xf32>
    %38 = vector.shape_cast %37 : vector<1x128x128xf32> to vector<128x128xf32>
    %cst_20 = arith.constant dense<0.000000e+00> : vector<24x128xf32>
    %39 = tpu.matmul %29, %38, %cst_20 {dimension_numbers = #tpu.dot_dimension_numbers<[1], [0], [0], [1], [0, 0, 1, 1], [], []>} : vector<24x128xf32>, vector<128x128xf32>, vector<24x128xf32> -> vector<24x128xf32>
    %40 = arith.addf %36, %39 : vector<24x128xf32>
    %c0_21 = arith.constant 0 : index
    %c0_22 = arith.constant 0 : index
    %41 = vector.load %arg4[%c0_21, %c0_22] : memref<1x128xf32, #tpu.memory_space<vmem>>, vector<1x128xf32>
    %42 = vector.broadcast %41 : vector<1x128xf32> to vector<24x128xf32>
    %43 = arith.addf %40, %42 : vector<24x128xf32>
    %cst_23 = arith.constant 0.000000e+00 : f32
    %44 = vector.broadcast %cst_23 : f32 to vector<24x128xf32>
    %45 = arith.maximumf %43, %44 : vector<24x128xf32>
    %46 = tpu.iota {dimensions = array<i32: 0>} : vector<24x128xi32>
    %c22_i32_24 = arith.constant 22 : i32
    %47 = tpu.dynamic_rotate %45 by %c22_i32_24 dim 0 : vector<24x128xf32>, i32 -> vector<24x128xf32>
    %c2_i32_25 = arith.constant 2 : i32
    %48 = tpu.dynamic_rotate %45 by %c2_i32_25 dim 0 : vector<24x128xf32>, i32 -> vector<24x128xf32>
    %c0_i32_26 = arith.constant 0 : i32
    %49 = vector.broadcast %c0_i32_26 : i32 to vector<24x128xi32>
    %50 = arith.cmpi eq, %46, %49 : vector<24x128xi32>
    %c0_i32_27 = arith.constant 0 : i32
    %51 = arith.cmpi eq, %arg1, %c0_i32_27 : i32
    %52 = vector.broadcast %51 : i1 to vector<24x128xi1>
    %53 = arith.andi %50, %52 : vector<24x128xi1>
    %54 = arith.select %53, %47, %45 : vector<24x128xi1>, vector<24x128xf32>
    %c17_i32 = arith.constant 17 : i32
    %55 = vector.broadcast %c17_i32 : i32 to vector<24x128xi32>
    %56 = arith.cmpi eq, %46, %55 : vector<24x128xi32>
    %c0_i32_28 = arith.constant 0 : i32
    %57 = arith.cmpi eq, %arg1, %c0_i32_28 : i32
    %58 = vector.broadcast %57 : i1 to vector<24x128xi1>
    %59 = arith.andi %56, %58 : vector<24x128xi1>
    %60 = arith.select %59, %48, %54 : vector<24x128xi1>, vector<24x128xf32>
    %c23_i32_29 = arith.constant 23 : i32
    %61 = tpu.dynamic_rotate %60 by %c23_i32_29 dim 0 : vector<24x128xf32>, i32 -> vector<24x128xf32>
    %c22_i32_30 = arith.constant 22 : i32
    %62 = tpu.dynamic_rotate %60 by %c22_i32_30 dim 0 : vector<24x128xf32>, i32 -> vector<24x128xf32>
    %c0_31 = arith.constant 0 : index
    %c0_32 = arith.constant 0 : index
    %c0_33 = arith.constant 0 : index
    %63 = vector.load %arg5[%c0_31, %c0_32, %c0_33] : memref<3x128x128xf32, #tpu.memory_space<vmem>>, vector<1x128x128xf32>
    %64 = vector.shape_cast %63 : vector<1x128x128xf32> to vector<128x128xf32>
    %cst_34 = arith.constant dense<0.000000e+00> : vector<24x128xf32>
    %65 = tpu.matmul %60, %64, %cst_34 {dimension_numbers = #tpu.dot_dimension_numbers<[1], [0], [0], [1], [0, 0, 1, 1], [], []>} : vector<24x128xf32>, vector<128x128xf32>, vector<24x128xf32> -> vector<24x128xf32>
    %c1_35 = arith.constant 1 : index
    %c0_36 = arith.constant 0 : index
    %c0_37 = arith.constant 0 : index
    %66 = vector.load %arg5[%c1_35, %c0_36, %c0_37] : memref<3x128x128xf32, #tpu.memory_space<vmem>>, vector<1x128x128xf32>
    %67 = vector.shape_cast %66 : vector<1x128x128xf32> to vector<128x128xf32>
    %cst_38 = arith.constant dense<0.000000e+00> : vector<24x128xf32>
    %68 = tpu.matmul %61, %67, %cst_38 {dimension_numbers = #tpu.dot_dimension_numbers<[1], [0], [0], [1], [0, 0, 1, 1], [], []>} : vector<24x128xf32>, vector<128x128xf32>, vector<24x128xf32> -> vector<24x128xf32>
    %69 = arith.addf %65, %68 : vector<24x128xf32>
    %c2_39 = arith.constant 2 : index
    %c0_40 = arith.constant 0 : index
    %c0_41 = arith.constant 0 : index
    %70 = vector.load %arg5[%c2_39, %c0_40, %c0_41] : memref<3x128x128xf32, #tpu.memory_space<vmem>>, vector<1x128x128xf32>
    %71 = vector.shape_cast %70 : vector<1x128x128xf32> to vector<128x128xf32>
    %cst_42 = arith.constant dense<0.000000e+00> : vector<24x128xf32>
    %72 = tpu.matmul %62, %71, %cst_42 {dimension_numbers = #tpu.dot_dimension_numbers<[1], [0], [0], [1], [0, 0, 1, 1], [], []>} : vector<24x128xf32>, vector<128x128xf32>, vector<24x128xf32> -> vector<24x128xf32>
    %73 = arith.addf %69, %72 : vector<24x128xf32>
    %c0_43 = arith.constant 0 : index
    %c0_44 = arith.constant 0 : index
    %74 = vector.load %arg6[%c0_43, %c0_44] : memref<1x128xf32, #tpu.memory_space<vmem>>, vector<1x128xf32>
    %75 = vector.broadcast %74 : vector<1x128xf32> to vector<24x128xf32>
    %76 = arith.addf %73, %75 : vector<24x128xf32>
    %cst_45 = arith.constant 5.000000e-01 : f32
    %77 = vector.broadcast %cst_45 : f32 to vector<24x128xf32>
    %78 = arith.mulf %76, %77 : vector<24x128xf32>
    %79 = vector.extract_strided_slice %78 {offsets = [0, 0], sizes = [16, 128], strides = [1, 1]} : vector<24x128xf32> to vector<16x128xf32>
    %80 = vector.extract_strided_slice %29 {offsets = [0, 0], sizes = [16, 128], strides = [1, 1]} : vector<24x128xf32> to vector<16x128xf32>
    %81 = arith.addf %80, %79 : vector<16x128xf32>
    %c0_46 = arith.constant 0 : index
    %c0_47 = arith.constant 0 : index
    %c0_48 = arith.constant 0 : index
    %82 = vector.load %arg7[%c0_46, %c0_47, %c0_48] : memref<1x16x128xf32, #tpu.memory_space<vmem>>, vector<1x16x128xf32>
    %83 = vector.shape_cast %82 : vector<1x16x128xf32> to vector<16x128xf32>
    %84 = vector.shape_cast %81 : vector<16x128xf32> to vector<1x16x128xf32>
    tpu.vector_store %arg7[%c0_46, %c0_47, %c0_48], %84 {strides = array<i32>} : memref<1x16x128xf32, #tpu.memory_space<vmem>>, vector<1x16x128xf32>,
    return
  }
  func.func @transform_1(%arg0: i32, %arg1: i32) -> (i32, i32, i32) {
    %c0_i32 = arith.constant 0 : i32
    %c0_i32_0 = arith.constant 0 : i32
    %c0_i32_1 = arith.constant 0 : i32
    %c0_i32_2 = arith.constant 0 : i32
    return %c0_i32, %c0_i32_0, %c0_i32_1 : i32, i32, i32
  }
  func.func @transform_2(%arg0: i32, %arg1: i32) -> (i32, i32) {
    %c0_i32 = arith.constant 0 : i32
    %c0_i32_0 = arith.constant 0 : i32
    %c0_i32_1 = arith.constant 0 : i32
    return %c0_i32, %c0_i32_0 : i32, i32
  }
  func.func @transform_3(%arg0: i32, %arg1: i32) -> (i32, i32, i32) {
    %c0_i32 = arith.constant 0 : i32
    %c0_i32_0 = arith.constant 0 : i32
    %c0_i32_1 = arith.constant 0 : i32
    %c0_i32_2 = arith.constant 0 : i32
    return %c0_i32, %c0_i32_0, %c0_i32_1 : i32, i32, i32
  }
  func.func @transform_4(%arg0: i32, %arg1: i32) -> (i32, i32) {
    %c0_i32 = arith.constant 0 : i32
    %c0_i32_0 = arith.constant 0 : i32
    %c0_i32_1 = arith.constant 0 : i32
    return %c0_i32, %c0_i32_0 : i32, i32
  }
  func.func @transform_5(%arg0: i32, %arg1: i32) -> (i32, i32, i32) {
    %c0_i32 = arith.constant 0 : i32
    %c0_i32_0 = arith.constant 0 : i32
    return %arg0, %arg1, %c0_i32 : i32, i32, i32
  }
}

</mosaic_0001>

<bundles_post_ra>
// kernel: tpu_custom_call.1
= control target key start
LH: loop header
LB: loop body
LE: loop exit
PB: predicated region body
PF: predicated region fallthrough
CT: control target
= control target key end

     0   :  { %10 = vsyncpa [#allocation5], 0  ;;  %s2137_s0 = inlined_call_operand.hbm [shape: f32[2,24,128], index: 0, kind: input, shape index: {}]   ;;  %s2138_s1 = inlined_call_operand.hbm [shape: f32[3,128,128], index: 1, kind: input, shape index: {}]   ;;  %s2139_s2 = inlined_call_operand.vmem [shape: f32[1,128], index: 2, kind: input, shape index: {}]   ;;  %s2140_s3 = inlined_call_operand.hbm [shape: f32[3,128,128], index: 3, kind: input, shape index: {}]   ;;  %s2141_s4 = inlined_call_operand.vmem [shape: f32[1,128], index: 4, kind: input, shape index: {}]   ;;  %s2142_s5 = inlined_call_operand.hbm [shape: f32[2,16,128], index: 5, kind: output, shape index: {}]  }
   0x1   :  { %11 = vsyncpa [#allocation8], 0 }
   0x2   :  { %12 = vsyncpa [#allocation6], 0 }
   0x3   :  { %14 = vsyncpa [#allocation6 + $0x1], 0  ;;  %s1756_s18 = smov 0   ;;  %s1758_s19 = smov 0  }
   0x4   :  { %s1760_s20 = smov 0   ;;  %s1762_s21 = smov 0  }
   0x5   :  { %s1764_s22 = smov 0   ;;  %s1766_s23 = smov 0  }
   0x6 LB: > { %s1089_s24 = sadd.s32 4294967295, %s1714_s23   ;;  %s1090_s25 = sadd.s32 4294967294, %s1714_s23   ;;  %s1714_s23 = sphi %s1766_s23, %s20_s23   ;;  %s1710_s22 = sphi %s1764_s22, %s2155_s22   ;;  %s1706_s21 = sphi %s1762_s21, %s2154_s21   ;;  %s1702_s20 = sphi %s1760_s20, %s2153_s20   ;;  %s1698_s19 = sphi %s1758_s19, %s2152_s19   ;;  %s1694_s18 = sphi %s1756_s18, %s2151_s18  }
   0x7   : > { %s32_s26 = sadd.s32 1, %s1710_s22  ;;  %s125_s27 = sadd.s32 1, %s1702_s20 }
   0x8   : > { %p34_p0 = scmp.ge.s32.totalorder %s32_s26, 2  ;;  %p135_p1 = scmp.ne.s32.totalorder %s1702_s20, %s1698_s19 }
   0x9   : > { %p136_p2 = scmp.eq.s32.totalorder %s1089_s24, 1  ;;  %p141_p3 = scmp.ne.s32.totalorder %s1698_s19, %s1694_s18 }
   0xa   : > { %s2157_s26 = smov (%p34_p0, %s32_s26), 0  ;;  %p142_p5 = scmp.eq.s32.totalorder %s1090_s25, 1 }
   0xb   : > { %p1796_p4 = por %p136_p2, %p135_p1  ;;  %s120_s29 = ssub.s32 %s1710_s22, %s2157_s26 }
   0xc   : > { %p1091_p6 = scmp.ge.s32.totalorder %s1714_s23, 1  ;;  %p123_p7 = scmp.eq.s32.totalorder %s120_s29, 0 }
   0xd   : > { %s2144_s28 = scalar_select %p1796_p4, 1, 0 }
   0xe   : > { %p1803_p8 = por %p142_p5, %p141_p3  ;;  %p149_p9 = scmp.lt.s32.totalorder %s1714_s23, 3 }
   0xf   : > { %s1809_s6 = scalar_select %p123_p7, %s1702_s20, %s125_s27  }
  0x10   : > { %s2145_s30 = scalar_select %p1803_p8, 1, 0 }
  0x11   : > { %p1811_p10 = pnand %p1091_p6, %p149_p9  ;;  %p1815_p11 = scmp.eq.s32.totalorder %s1089_s24, 0 }
  0x12   : > { %s1716_s9 = smov [#allocation4]   ;;  %s1717_s12 = smov [#allocation7]  }
  0x13   : > { %p1481_p12 = pneg %p1811_p10  ;;  %s161_s10 = sshll.u32 %s1716_s9, 4  ;;  %s162_s10 = int_to_ptr.vmem [resolvable:$true] %s161_s10 }
  0x14   : > { %s177_s13 = sshll.u32 %s1717_s12, 4  ;;  %s1565_s14 = scalar_lea.vmem %s162_s10, 6144  ;;  %s178_s13 = int_to_ptr.vmem [resolvable:$true] %s177_s13 }
  0x15   : > { %p1823_p13 = pnand %p1815_p11, %p1481_p12  ;;  %p1566_p1 = scmp.ne.s32.totalorder %s162_s10, %s1565_s14 }
  0x16   : > { %p1573_p5 = scmp.lt.s32.totalorder %s162_s10, %s162_s10  ;;  %p1574_p6 = scmp.lt.s32.totalorder %s1565_s14, %s1565_s14 }
  0x17   : > { %p1556_p0 = pneg %p1823_p13 }
  0x18   : > { %p1575_p7 = por %p1574_p6, %p1573_p5 }
  0x19   : > { %p1568_p2 = pnand %p1566_p1, %p1556_p0 }
  0x1b   : > { %p1569_p3 = pneg %p1568_p2 }
  0x1d   : > { %p1576_p9 = pnand %p1575_p7, %p1569_p3 }
  0x1f   : > { %1579 = shalt.err (!%p1576_p9)
}
  0x20   : > { %s1718_s15 = smov 128   ;;  %s1719_s16 = smov 8  }
  0x21   : > { %1484 = dma.hbm_to_vmem [thread:$0]  (!%p1823_p13), %s2138_s1, 6144, %s162_s10, [#allocation5], %s1718_s15, %s1718_s15, %s1719_s16  }
  0x22   : > { %s1591_s25 = scalar_lea.vmem %s178_s13, 6144  ;;  %p1599_p8 = scmp.lt.s32.totalorder %s178_s13, %s178_s13 }
  0x23   : > { %p1592_p12 = scmp.ne.s32.totalorder %s178_s13, %s1591_s25  ;;  %p1600_p4 = scmp.lt.s32.totalorder %s1591_s25, %s1591_s25 }
  0x25   : > { %p1594_p1 = pnand %p1592_p12, %p1556_p0  ;;  %p1601_p5 = por %p1600_p4, %p1599_p8 }
  0x27   : > { %p1595_p2 = pneg %p1594_p1 }
  0x29   : > { %p1602_p3 = pnand %p1601_p5, %p1595_p2 }
  0x2b   : > { %1605 = shalt.err (!%p1602_p3)
}
  0x2c   : > { %1487 = dma.hbm_to_vmem [thread:$0]  (!%p1823_p13), %s2140_s3, 6144, %s178_s13, [#allocation8], %s1718_s15, %s1718_s15, %s1719_s16  }
  0x2d   : > { %196 = sbr.rel (%p1811_p10) target bundleno = 604 (0x25c), region = 36 }
  0x32   : > { %1679 = dma.done.wait (%p1815_p11), [#allocation5], 6144  }
  0x33   : > { %1681 = vsyncadd (%p1815_p11), [#allocation5], 4294961152 }
  0x34   : > { %1683 = dma.done.wait (%p1815_p11), [#allocation8], 6144  }
  0x35   : > { %1685 = vsyncadd (%p1815_p11), [#allocation8], 4294961152  ;;  %s218_s9 = sand.u32 1, %s1698_s19   ;;  %s1109_s10 = smul.u32 384, %s1706_s21 }
  0x36   : > { %s1097_s7 = sshll.u32 %s218_s9, 4  ;;  %s1720_s14 = smov [#allocation2]  }
  0x37   : > { %s241_s13 = scalar_lea.hbm %s2137_s0, %s1109_s10  ;;  %s249_s15 = sshll.u32 %s1720_s14, 4  ;;  %s250_s15 = int_to_ptr.vmem [resolvable:$true] %s249_s15 }
  0x38   : > { %s1606_s16 = scalar_lea.hbm %s241_s13, 384  ;;  %s1608_s8 = scalar_lea.hbm %s2137_s0, 768 }
  0x39   : > { %p1607_p4 = scmp.ne.s32.totalorder %s241_s13, %s1606_s16  ;;  %p1609_p8 = scmp.lt.s32.totalorder %s241_s13, %s2137_s0 }
  0x3a   : > { %p1610_p10 = scmp.lt.s32.totalorder %s1608_s8, %s1606_s16 }
  0x3c   : > { %p1611_p11 = por %p1610_p10, %p1609_p8 }
  0x3e   : > { %p1612_p13 = pnand %p1611_p11, %p1607_p4 }
  0x40   : > { %1615 = shalt.err (!%p1612_p13)  }
  0x41   : > { %s1616_s29 = scalar_lea.vmem %s250_s15, 384  ;;  %s1620_s10 = scalar_lea.vmem %s250_s15, 768 }
  0x42   : > { %p1617_p0 = scmp.ne.s32.totalorder %s250_s15, %s1616_s29  ;;  %p1621_p6 = scmp.lt.s32.totalorder %s250_s15, %s250_s15 }
  0x43   : > { %p1622_p7 = scmp.lt.s32.totalorder %s1620_s10, %s1616_s29 }
  0x45   : > { %p1623_p9 = por %p1622_p7, %p1621_p6 }
  0x47   : > { %p1624_p12 = pnand %p1623_p9, %p1617_p0 }
  0x49   : > { %1627 = shalt.err (!%p1624_p12)  }
  0x4a   : > { %252 = dma.hbm_to_vmem [thread:$0]  %s241_s13, 384, %s250_s15, [#allocation3] }
  0x4b   : > { %s1868_s11 = scalar_lea.vmem [#allocation9], %s1097_s7 }
  0x4c   : > { %1686 = dma.done.wait [#allocation3], 384 }
  0x4d   : > { %1687 = vsyncadd [#allocation3], 4294966912  ;;  %v1721_v0 = vmov 0.0   ;;  %vm1722_vm0 = vmmov 0   ;;  %v336_v1 = vld [vmem:[#allocation4 + $0xf8] sm:$0xff]  ;;  %v335_v3 = vld [vmem:[#allocation4 + $0xf0] sm:$0xff]  ;;  %v291_v23 = vlaneseq }
  0x4e   : > { %1225 = vmatprep.subr.mxu0 %v1721_v0  ;;  %1266 = vmatprep.subr.mxu1 %v1721_v0  ;;  %v319_v2 = vld [vmem:[#allocation4 + $0x78] sm:$0xff]  ;;  %v318_v4 = vld [vmem:[#allocation4 + $0x70] sm:$0xff]  ;;  %v334_v5 = vld [vmem:[#allocation4 + $0xe8] sm:$0xff]  ;;  %s1110_s15 = sshll.u32 %s1706_s21, 8  ;;  %s978_s16 = sshll.u32 %s1868_s11, 4  ;;  %s2086_s16 = int_to_ptr.vmem [resolvable:$true] %s978_s16 }
  0x4f   : > { %1257 = vmatprep.mubr.msk.f32.mxu0 %vm1722_vm0, %v1721_v0  ;;  %1298 = vmatprep.mubr.msk.f32.mxu1 %vm1722_vm0, %v1721_v0  ;;  %v317_v6 = vld [vmem:[#allocation4 + $0x68] sm:$0xff]  ;;  %v333_v7 = vld [vmem:[#allocation4 + $0xe0] sm:$0xff]  ;;  %v332_v9 = vld [vmem:[#allocation4 + $0xd8] sm:$0xff]  ;;  %v1902_v30 = vshrl.u32 %v291_v23, 7  ;;  %s2084_s8 = scalar_lea.hbm %s2142_s5, %s1110_s15  ;;  %s2092_s21 = scalar_lea.sflag [#allocation6], %s218_s9 }
  0x50   : > { %1226 = vmatpush3.msra.mxu0 %v336_v1  ;;  %1267 = vmatpush3.msra.mxu1 %v319_v2  ;;  %v316_v8 = vld [vmem:[#allocation4 + $0x60] sm:$0xff]  ;;  %v315_v10 = vld [vmem:[#allocation4 + $0x58] sm:$0xff]  ;;  %v331_v11 = vld [vmem:[#allocation4 + $0xd0] sm:$0xff]  ;;  %s1628_s25 = scalar_lea.vmem %s2086_s16, 256  ;;  %p2149_p2 = scmp.ne.s32.totalorder %s2144_s28, 0 }
  0x51   : > { %1227 = vmatprep.subr.mxu0 %v1721_v0  ;;  %1268 = vmatprep.subr.mxu1 %v1721_v0  ;;  %v314_v12 = vld [vmem:[#allocation4 + $0x50] sm:$0xff]  ;;  %v330_v13 = vld [vmem:[#allocation4 + $0xc8] sm:$0xff]  ;;  %v329_v15 = vld [vmem:[#allocation4 + $0xc0] sm:$0xff]  ;;  %vm293_vm1 = vcmp.lt.s32.totalorder %v1902_v30, 7  ;;  %vm300_vm2 = vcmp.lt.s32.totalorder %v1902_v30, 6  ;;  %vm625_vm3 = vcmp.eq.s32.totalorder %v1902_v30, 0  ;;  %p1629_p1 = scmp.ne.s32.totalorder %s2086_s16, %s1628_s25 }
  0x52   : > { %1228 = vmatpush3.msra.mxu0 %v335_v3  ;;  %1269 = vmatpush3.msra.mxu1 %v318_v4  ;;  %v313_v14 = vld [vmem:[#allocation4 + $0x48] sm:$0xff]  ;;  %v312_v16 = vld [vmem:[#allocation4 + $0x40] sm:$0xff]  ;;  %v328_v17 = vld [vmem:[#allocation4 + $0xb8] sm:$0xff]  ;;  %vm621_vm4 = vcmp.lt.s32.totalorder %v1902_v30, 2  ;;  %s1723_s27 = smov [#allocation9]  }
  0x53   : > { %1229 = vmatprep.subr.mxu0 %v1721_v0  ;;  %1270 = vmatprep.subr.mxu1 %v1721_v0  ;;  %v311_v18 = vld [vmem:[#allocation4 + $0x38] sm:$0xff]  ;;  %v327_v19 = vld [vmem:[#allocation4 + $0xb0] sm:$0xff]  ;;  %v326_v21 = vld [vmem:[#allocation4 + $0xa8] sm:$0xff]  ;;  %p1630_p5 = pnand %p1629_p1, %p2149_p2  ;;  %s1632_s29 = sshll.u32 %s1723_s27, 4  ;;  %s1633_s29 = int_to_ptr.vmem [resolvable:$false] %s1632_s29 }
  0x54   : > { %1230 = vmatpush3.msra.mxu0 %v334_v5  ;;  %1271 = vmatpush3.msra.mxu1 %v317_v6  ;;  %v310_v20 = vld [vmem:[#allocation4 + $0x30] sm:$0xff]  ;;  %v309_v22 = vld [vmem:[#allocation4 + $0x28] sm:$0xff]  ;;  %v325_v24 = vld [vmem:[#allocation4 + $0xa0] sm:$0xff]  ;;  %s1634_s10 = scalar_lea.vmem %s1633_s29, 512  ;;  %p1635_p4 = scmp.lt.s32.totalorder %s2086_s16, %s1633_s29 }
  0x55   : > { %1231 = vmatprep.subr.mxu0 %v1721_v0  ;;  %1272 = vmatprep.subr.mxu1 %v1721_v0  ;;  %v308_v25 = vld [vmem:[#allocation4 + $0x20] sm:$0xff]  ;;  %v324_v26 = vld [vmem:[#allocation4 + $0x98] sm:$0xff]  ;;  %v1898_v28 = vld [vmem:[#allocation2] sm:$0xff]  ;;  %p1631_p3 = pneg %p1630_p5  ;;  %p1636_p8 = scmp.lt.s32.totalorder %s1634_s10, %s1628_s25 }
  0x56   : > { %1232 = vmatpush3.msra.mxu0 %v333_v7  ;;  %1273 = vmatpush3.msra.mxu1 %v316_v8  ;;  %v307_v27 = vld [vmem:[#allocation4 + $0x18] sm:$0xff]  ;;  %v323_v31 = vld [vmem:[#allocation4 + $0x90] sm:$0xff]  ;;  %v288_v33 = vrot.slane %v1898_v28, 1  ;;  %v322_v35 = vld [vmem:[#allocation4 + $0x88] sm:$0xff]  ;;  %v297_v58 = vrot.slane %v1898_v28, 2 }
  0x57   : > { %1233 = vmatprep.subr.mxu0 %v1721_v0  ;;  %1274 = vmatprep.subr.mxu1 %v1721_v0  ;;  %v1900_v29 = vld [vmem:[#allocation2 + $0x8] sm:$0xff]  ;;  %v306_v32 = vld [vmem:[#allocation4 + $0x10] sm:$0xff]  ;;  %v305_v36 = vld [vmem:[#allocation4 + $0x8] sm:$0xff]  ;;  %p1637_p10 = por %p1636_p8, %p1635_p4 }
  0x58   : > { %1234 = vmatpush3.msra.mxu0 %v332_v9  ;;  %1275 = vmatpush3.msra.mxu1 %v315_v10  ;;  %v289_v34 = vrot.slane %v1900_v29, 1  ;;  %v1911_v37 = vld [vmem:[#allocation2 + $0x10] sm:$0xff]  ;;  %v513_v42 = vld [vmem:[#allocation4 + $0x178] sm:$0xff]  ;;  %v512_v43 = vld [vmem:[#allocation4 + $0x170] sm:$0xff]  ;;  %v298_v59 = vrot.slane %v1900_v29, 2 }
  0x59   : > { %1235 = vmatprep.subr.mxu0 %v1721_v0  ;;  %1276 = vmatprep.subr.mxu1 %v1721_v0  ;;  %v321_v38 = vld [vmem:[#allocation4 + $0x80] sm:$0xff]  ;;  %v290_v41 = vrot.slane %v1911_v37, 1  ;;  %v511_v45 = vld [vmem:[#allocation4 + $0x168] sm:$0xff]  ;;  %v509_v48 = vld [vmem:[#allocation4 + $0x158] sm:$0xff]  ;;  %v299_v63 = vrot.slane %v1911_v37, 2  ;;  %p1638_p11 = pnand %p1637_p10, %p1631_p3 }
  0x5a   : > { %1236 = vmatpush3.msra.mxu0 %v331_v11  ;;  %1277 = vmatpush3.msra.mxu1 %v314_v12  ;;  %v304_v39 = vld [vmem:[#allocation4] sm:$0xff]  ;;  %v295_v40 = vsel %vm293_vm1, %v288_v33, %v289_v34  ;;  %v508_v49 = vld [vmem:[#allocation4 + $0x150] sm:$0xff]  ;;  %v507_v50 = vld [vmem:[#allocation4 + $0x148] sm:$0xff]  ;;  %v1960_v62 = vsel %vm300_vm2, %v297_v58, %v298_v59 }
  0x5b   : > { %1237 = vmatprep.subr.mxu0 %v1721_v0  ;;  %1278 = vmatprep.subr.mxu1 %v1721_v0  ;;  %v294_v44 = vsel %vm293_vm1, %v289_v34, %v290_v41  ;;  %v510_v46 = vld [vmem:[#allocation4 + $0x160] sm:$0xff]  ;;  %v296_v47 = vsel %vm293_vm1, %v290_v41, %v288_v33  ;;  %v505_v52 = vld [vmem:[#allocation4 + $0x138] sm:$0xff]  ;;  %v504_v53 = vld [vmem:[#allocation4 + $0x130] sm:$0xff]  ;;  %v1970_v1 = vsel %vm300_vm2, %v298_v59, %v299_v63 }
  0x5c   : > { %1238 = vmatpush3.msra.mxu0 %v330_v13  ;;  %1279 = vmatpush3.msra.mxu1 %v313_v14  ;;  %v506_v51 = vld [vmem:[#allocation4 + $0x140] sm:$0xff]  ;;  %v503_v54 = vld [vmem:[#allocation4 + $0x128] sm:$0xff]  ;;  %v501_v56 = vld [vmem:[#allocation4 + $0x118] sm:$0xff]  ;;  %v303_v2 = vsel %vm300_vm2, %v299_v63, %v297_v58 }
  0x5d   : > { %1239 = vmatprep.subr.mxu0 %v1721_v0  ;;  %1280 = vmatprep.subr.mxu1 %v1721_v0  ;;  %v502_v55 = vld [vmem:[#allocation4 + $0x120] sm:$0xff]  ;;  %v500_v57 = vld [vmem:[#allocation4 + $0x110] sm:$0xff]  ;;  %v499_v60 = vld [vmem:[#allocation4 + $0x108] sm:$0xff] }
  0x5e   : > { %1240 = vmatpush3.msra.mxu0 %v329_v15  ;;  %1281 = vmatpush3.msra.mxu1 %v312_v16  ;;  %v498_v61 = vld [vmem:[#allocation4 + $0x100] sm:$0xff]  ;;  %v673_v3 = vld [vmem:[#allocation7 + $0x78] sm:$0xff]  ;;  %v672_v5 = vld [vmem:[#allocation7 + $0x70] sm:$0xff] }
  0x5f   : > { %1241 = vmatprep.subr.mxu0 %v1721_v0  ;;  %1282 = vmatprep.subr.mxu1 %v1721_v0  ;;  %v690_v4 = vld [vmem:[#allocation7 + $0xf8] sm:$0xff]  ;;  %v689_v6 = vld [vmem:[#allocation7 + $0xf0] sm:$0xff]  ;;  %v671_v7 = vld [vmem:[#allocation7 + $0x68] sm:$0xff] }
  0x60   : > { %1242 = vmatpush3.msra.mxu0 %v328_v17  ;;  %1283 = vmatpush3.msra.mxu1 %v311_v18  ;;  %v688_v8 = vld [vmem:[#allocation7 + $0xe8] sm:$0xff]  ;;  %v670_v9 = vld [vmem:[#allocation7 + $0x60] sm:$0xff]  ;;  %v669_v11 = vld [vmem:[#allocation7 + $0x58] sm:$0xff] }
  0x61   : > { %1243 = vmatprep.subr.mxu0 %v1721_v0  ;;  %1284 = vmatprep.subr.mxu1 %v1721_v0  ;;  %v687_v10 = vld [vmem:[#allocation7 + $0xe0] sm:$0xff]  ;;  %v686_v12 = vld [vmem:[#allocation7 + $0xd8] sm:$0xff]  ;;  %v668_v13 = vld [vmem:[#allocation7 + $0x50] sm:$0xff] }
  0x62   : > { %1244 = vmatpush3.msra.mxu0 %v327_v19  ;;  %1285 = vmatpush3.msra.mxu1 %v310_v20  ;;  %v685_v14 = vld [vmem:[#allocation7 + $0xd0] sm:$0xff]  ;;  %v667_v15 = vld [vmem:[#allocation7 + $0x48] sm:$0xff]  ;;  %v666_v17 = vld [vmem:[#allocation7 + $0x40] sm:$0xff] }
  0x63   : > { %1245 = vmatprep.subr.mxu0 %v1721_v0  ;;  %1286 = vmatprep.subr.mxu1 %v1721_v0  ;;  %v684_v16 = vld [vmem:[#allocation7 + $0xc8] sm:$0xff]  ;;  %v683_v18 = vld [vmem:[#allocation7 + $0xc0] sm:$0xff]  ;;  %v665_v19 = vld [vmem:[#allocation7 + $0x38] sm:$0xff] }
  0x64   : > { %1246 = vmatpush3.msra.mxu0 %v326_v21  ;;  %1287 = vmatpush3.msra.mxu1 %v309_v22  ;;  %v682_v20 = vld [vmem:[#allocation7 + $0xb8] sm:$0xff]  ;;  %v664_v21 = vld [vmem:[#allocation7 + $0x30] sm:$0xff]  ;;  %v663_v23 = vld [vmem:[#allocation7 + $0x28] sm:$0xff] }
  0x65   : > { %1247 = vmatprep.subr.mxu0 %v1721_v0  ;;  %1288 = vmatprep.subr.mxu1 %v1721_v0  ;;  %v681_v22 = vld [vmem:[#allocation7 + $0xb0] sm:$0xff]  ;;  %v676_v33 = vld [vmem:[#allocation7 + $0x88] sm:$0xff]  ;;  %v658_v34 = vld [vmem:[#allocation7] sm:$0xff] }
  0x66   : > { %1248 = vmatpush3.msra.mxu0 %v325_v24  ;;  %1289 = vmatpush3.msra.mxu1 %v308_v25  ;;  %v680_v24 = vld [vmem:[#allocation7 + $0xa8] sm:$0xff]  ;;  %v662_v25 = vld [vmem:[#allocation7 + $0x20] sm:$0xff] }
  0x67   : > { %1249 = vmatprep.subr.mxu0 %v1721_v0  ;;  %1290 = vmatprep.subr.mxu1 %v1721_v0 }
  0x68   : > { %1250 = vmatpush3.msra.mxu0 %v324_v26  ;;  %1291 = vmatpush3.msra.mxu1 %v307_v27  ;;  %v679_v26 = vld [vmem:[#allocation7 + $0xa0] sm:$0xff]  ;;  %v661_v27 = vld [vmem:[#allocation7 + $0x18] sm:$0xff] }
  0x69   : > { %1251 = vmatprep.subr.mxu0 %v1721_v0  ;;  %1292 = vmatprep.subr.mxu1 %v1721_v0 }
  0x6a   : > { %1252 = vmatpush3.msra.mxu0 %v323_v31  ;;  %1293 = vmatpush3.msra.mxu1 %v306_v32  ;;  %v677_v31 = vld [vmem:[#allocation7 + $0x90] sm:$0xff]  ;;  %v659_v32 = vld [vmem:[#allocation7 + $0x8] sm:$0xff] }
  0x6b   : > { %1253 = vmatprep.subr.mxu0 %v1721_v0  ;;  %1294 = vmatprep.subr.mxu1 %v1721_v0 }
  0x6c   : > { %1254 = vmatpush3.msra.mxu0 %v322_v35  ;;  %1295 = vmatpush3.msra.mxu1 %v305_v36  ;;  %v675_v35 = vld [vmem:[#allocation7 + $0x80] sm:$0xff] }
  0x6d   : > { %1255 = vmatprep.subr.mxu0 %v1721_v0  ;;  %1296 = vmatprep.subr.mxu1 %v1721_v0 }
  0x6e   : > { %1256 = vmatpush3.msra.mxu0 %v321_v38  ;;  %1297 = vmatpush3.msra.mxu1 %v304_v39 }
  0x6f   : > { %1258 = vmatmul.mubr.f32.vlgmr.msra.gmra.mxu0 %v295_v40  ;;  %1307 = vmatprep.subr.mxu0 %v1721_v0 }
  0x70   : > { %1299 = vmatmul.mubr.f32.vlgmr.msra.gmra.mxu1 %v1898_v28  ;;  %1308 = vmatpush3.msra.mxu0 %v513_v42  ;;  %v678_v28 = vld [vmem:[#allocation7 + $0x98] sm:$0xff] }
  0x71   : > { %1309 = vmatprep.subr.mxu0 %v1721_v0  ;;  %1260 = vmatprep.mubr.msk.f32.mxu0 %vm1722_vm0, %v1721_v0 }
  0x72   : > { %1310 = vmatpush3.msra.mxu0 %v512_v43  ;;  %1301 = vmatprep.mubr.msk.f32.mxu1 %vm1722_vm0, %v1721_v0 }
  0x73   : > { %1311 = vmatprep.subr.mxu0 %v1721_v0  ;;  %1261 = vmatmul.mubr.f32.gmra.mxu0 %v294_v44 }
  0x74   : > { %1312 = vmatpush3.msra.mxu0 %v511_v45  ;;  %1302 = vmatmul.mubr.f32.gmra.mxu1 %v1900_v29  ;;  %v660_v29 = vld [vmem:[#allocation7 + $0x10] sm:$0xff] }
  0x75   : > { %1313 = vmatprep.subr.mxu0 %v1721_v0  ;;  %1263 = vmatprep.mubr.msk.f32.mxu0 %vm1722_vm0, %v1721_v0 }
  0x76   : > { %1314 = vmatpush3.msra.mxu0 %v510_v46  ;;  %1304 = vmatprep.mubr.msk.f32.mxu1 %vm1722_vm0, %v1721_v0 }
  0x77   : > { %1315 = vmatprep.subr.mxu0 %v1721_v0  ;;  %1264 = vmatmul.mubr.f32.gmra.mxu0 %v296_v47 }
  0x78   : > { %1316 = vmatpush3.msra.mxu0 %v509_v48  ;;  %1305 = vmatmul.mubr.f32.gmra.mxu1 %v1911_v37 }
  0x79   : > { %1317 = vmatprep.subr.mxu0 %v1721_v0  ;;  %1339 = vmatprep.mubr.msk.f32.mxu0 %vm1722_vm0, %v1721_v0 }
  0x7a   : > { %1318 = vmatpush3.msra.mxu0 %v508_v49  ;;  %1348 = vmatprep.subr.mxu1 %v1721_v0 }
  0x7b   : > { %1319 = vmatprep.subr.mxu0 %v1721_v0  ;;  %1380 = vmatprep.mubr.msk.f32.mxu1 %vm1722_vm0, %v1721_v0 }
  0x7c   : > { %1320 = vmatpush3.msra.mxu0 %v507_v50  ;;  %1349 = vmatpush3.msra.mxu1 %v690_v4  ;;  %v1100_v50 = vld [vmem:[%s2139_s2] ss:$0 sm:$0xff] }
  0x7d   : > { %1321 = vmatprep.subr.mxu0 %v1721_v0  ;;  %1350 = vmatprep.subr.mxu1 %v1721_v0 }
  0x7e   : > { %1322 = vmatpush3.msra.mxu0 %v506_v51  ;;  %1351 = vmatpush3.msra.mxu1 %v689_v6 }
  0x7f   : > { %1323 = vmatprep.subr.mxu0 %v1721_v0  ;;  %1352 = vmatprep.subr.mxu1 %v1721_v0 }
  0x80   : > { %1324 = vmatpush3.msra.mxu0 %v505_v52  ;;  %1353 = vmatpush3.msra.mxu1 %v688_v8 }
  0x81   : > { %1325 = vmatprep.subr.mxu0 %v1721_v0  ;;  %1354 = vmatprep.subr.mxu1 %v1721_v0 }
  0x82   : > { %1326 = vmatpush3.msra.mxu0 %v504_v53  ;;  %1355 = vmatpush3.msra.mxu1 %v687_v10 }
  0x83   : > { %1327 = vmatprep.subr.mxu0 %v1721_v0  ;;  %1356 = vmatprep.subr.mxu1 %v1721_v0 }
  0x84   : > { %1328 = vmatpush3.msra.mxu0 %v503_v54  ;;  %1357 = vmatpush3.msra.mxu1 %v686_v12 }
  0x85   : > { %1329 = vmatprep.subr.mxu0 %v1721_v0  ;;  %1358 = vmatprep.subr.mxu1 %v1721_v0 }
  0x86   : > { %1330 = vmatpush3.msra.mxu0 %v502_v55  ;;  %1359 = vmatpush3.msra.mxu1 %v685_v14 }
  0x87   : > { %1331 = vmatprep.subr.mxu0 %v1721_v0  ;;  %1360 = vmatprep.subr.mxu1 %v1721_v0 }
  0x88   : > { %1332 = vmatpush3.msra.mxu0 %v501_v56  ;;  %1361 = vmatpush3.msra.mxu1 %v684_v16 }
  0x89   : > { %1333 = vmatprep.subr.mxu0 %v1721_v0  ;;  %1362 = vmatprep.subr.mxu1 %v1721_v0 }
  0x8a   : > { %1334 = vmatpush3.msra.mxu0 %v500_v57  ;;  %1363 = vmatpush3.msra.mxu1 %v683_v18 }
  0x8b   : > { %1335 = vmatprep.subr.mxu0 %v1721_v0  ;;  %1364 = vmatprep.subr.mxu1 %v1721_v0 }
  0x8c   : > { %1336 = vmatpush3.msra.mxu0 %v499_v60  ;;  %1365 = vmatpush3.msra.mxu1 %v682_v20 }
  0x8d   : > { %1337 = vmatprep.subr.mxu0 %v1721_v0  ;;  %1366 = vmatprep.subr.mxu1 %v1721_v0 }
  0x8e   : > { %1338 = vmatpush3.msra.mxu0 %v498_v61  ;;  %1367 = vmatpush3.msra.mxu1 %v681_v22 }
  0x8f   : > { %1340 = vmatmul.mubr.f32.vlgmr.msra.gmra.mxu0 %v1960_v62  ;;  %1389 = vmatprep.subr.mxu0 %v1721_v0 }
  0x90   : > { %1342 = vmatprep.mubr.msk.f32.mxu0 %vm1722_vm0, %v1721_v0  ;;  %1390 = vmatpush3.msra.mxu0 %v673_v3  ;;  %v611_v3 = vadd.s32 16, %v1902_v30  ;;  %v1101_v30 = vld [vmem:[%s2141_s4] ss:$0 sm:$0xff] }
  0x91   : > { %1391 = vmatprep.subr.mxu0 %v1721_v0  ;;  %1368 = vmatprep.subr.mxu1 %v1721_v0 }
  0x92   : > { %1392 = vmatpush3.msra.mxu0 %v672_v5  ;;  %1369 = vmatpush3.msra.mxu1 %v680_v24  ;;  %vm639_vm5 = vcmp.eq.s32.totalorder %v611_v3, 17  ;;  %v861_v24 = vld [vmem:[#allocation7 + $0x158] sm:$0xff] }
  0x93   : > { %1343 = vmatmul.mubr.f32.gmra.mxu0 %v1970_v1  ;;  %1393 = vmatprep.subr.mxu0 %v1721_v0 }
  0x94   : > { %1345 = vmatprep.mubr.msk.f32.mxu0 %vm1722_vm0, %v1721_v0  ;;  %1394 = vmatpush3.msra.mxu0 %v671_v7 }
  0x95   : > { %1395 = vmatprep.subr.mxu0 %v1721_v0  ;;  %1370 = vmatprep.subr.mxu1 %v1721_v0 }
  0x96   : > { %1396 = vmatpush3.msra.mxu0 %v670_v9  ;;  %1371 = vmatpush3.msra.mxu1 %v679_v26  ;;  %v860_v26 = vld [vmem:[#allocation7 + $0x150] sm:$0xff] }
  0x97   : > { %1346 = vmatmul.mubr.f32.gmra.mxu0 %v303_v2  ;;  %1397 = vmatprep.subr.mxu0 %v1721_v0 }
  0x98   : > { %1421 = vmatprep.mubr.msk.f32.mxu0 %vm1722_vm0, %v1721_v0  ;;  %1398 = vmatpush3.msra.mxu0 %v669_v11 }
  0x99   : > { %1399 = vmatprep.subr.mxu0 %v1721_v0  ;;  %1372 = vmatprep.subr.mxu1 %v1721_v0 }
  0x9a   : > { %1400 = vmatpush3.msra.mxu0 %v668_v13  ;;  %1373 = vmatpush3.msra.mxu1 %v678_v28  ;;  %v858_v28 = vld [vmem:[#allocation7 + $0x140] sm:$0xff] }
  0x9b   : > { %1401 = vmatprep.subr.mxu0 %v1721_v0  ;;  %1374 = vmatprep.subr.mxu1 %v1721_v0 }
  0x9c   : > { %1402 = vmatpush3.msra.mxu0 %v667_v15  ;;  %1375 = vmatpush3.msra.mxu1 %v677_v31  ;;  %v865_v15 = vld [vmem:[#allocation7 + $0x178] sm:$0xff]  ;;  %v856_v31 = vld [vmem:[#allocation7 + $0x130] sm:$0xff] }
  0x9d   : > { %1403 = vmatprep.subr.mxu0 %v1721_v0  ;;  %1376 = vmatprep.subr.mxu1 %v1721_v0 }
  0x9e   : > { %1404 = vmatpush3.msra.mxu0 %v666_v17  ;;  %1377 = vmatpush3.msra.mxu1 %v676_v33  ;;  %v854_v33 = vld [vmem:[#allocation7 + $0x120] sm:$0xff] }
  0x9f   : > { %1405 = vmatprep.subr.mxu0 %v1721_v0  ;;  %1378 = vmatprep.subr.mxu1 %v1721_v0 }
  0xa0   : > { %1406 = vmatpush3.msra.mxu0 %v665_v19  ;;  %1379 = vmatpush3.msra.mxu1 %v675_v35  ;;  %v864_v19 = vld [vmem:[#allocation7 + $0x170] sm:$0xff] }
  0xa1   : > { %1407 = vmatprep.subr.mxu0 %v1721_v0  ;;  %1430 = vmatprep.subr.mxu1 %v1721_v0  ;;  %v852_v35 = vld [vmem:[#allocation7 + $0x110] sm:$0xff] }
  0xa2   : > { %1408 = vmatpush3.msra.mxu0 %v664_v21  ;;  %v863_v21 = vld [vmem:[#allocation7 + $0x168] sm:$0xff] }
  0xa3   : > { %1409 = vmatprep.subr.mxu0 %v1721_v0 }
  0xa4   : > { %1410 = vmatpush3.msra.mxu0 %v663_v23  ;;  %v862_v23 = vld [vmem:[#allocation7 + $0x160] sm:$0xff] }
  0xa5   : > { %1411 = vmatprep.subr.mxu0 %v1721_v0 }
  0xa6   : > { %1412 = vmatpush3.msra.mxu0 %v662_v25 }
  0xa7   : > { %1413 = vmatprep.subr.mxu0 %v1721_v0 }
  0xa8   : > { %1414 = vmatpush3.msra.mxu0 %v661_v27  ;;  %v859_v27 = vld [vmem:[#allocation7 + $0x148] sm:$0xff] }
  0xa9   : > { %1415 = vmatprep.subr.mxu0 %v1721_v0 }
  0xaa   : > { %1416 = vmatpush3.msra.mxu0 %v660_v29  ;;  %v857_v29 = vld [vmem:[#allocation7 + $0x138] sm:$0xff] }
  0xab   : > { %1417 = vmatprep.subr.mxu0 %v1721_v0 }
  0xac   : > { %1418 = vmatpush3.msra.mxu0 %v659_v32  ;;  %v855_v32 = vld [vmem:[#allocation7 + $0x128] sm:$0xff] }
  0xad   : > { %1419 = vmatprep.subr.mxu0 %v1721_v0 }
  0xae   : > { %1420 = vmatpush3.msra.mxu0 %v658_v34  ;;  %v853_v34 = vld [vmem:[#allocation7 + $0x118] sm:$0xff] }
 0x12f   : > { %v403_v36 = vpop.f32.mrf.mxu0 }
 0x130   : > { %v483_v37 = vpop.f32.mrf.mxu1 }
 0x131   : > { %v1259_v38 = vpop.f32.mrf.mxu0  ;;  %v484_v48 = vadd.f32 %v483_v37, %v403_v36  ;;  %v851_v36 = vld [vmem:[#allocation7 + $0x108] sm:$0xff] }
 0x132   : > { %v1300_v39 = vpop.f32.mrf.mxu1  ;;  %v850_v38 = vld [vmem:[#allocation7 + $0x100] sm:$0xff] }
 0x133   : > { %v408_v40 = vpop.f32.mrf.mxu0 }
 0x134   : > { %v488_v41 = vpop.f32.mrf.mxu1 }
 0x135   : > { %v1262_v42 = vpop.f32.mrf.mxu0  ;;  %v489_v53 = vadd.f32 %v488_v41, %v408_v40 }
 0x136   : > { %v1303_v43 = vpop.f32.mrf.mxu1 }
 0x137   : > { %v413_v44 = vpop.f32.mrf.mxu0 }
 0x138   : > { %v493_v45 = vpop.f32.mrf.mxu1 }
 0x139   : > { %v1265_v46 = vpop.f32.mrf.mxu0  ;;  %v494_v58 = vadd.f32 %v493_v45, %v413_v44 }
 0x13a   : > { %v1306_v47 = vpop.f32.mrf.mxu1 }
 0x14f   : > { %v580_v49 = vpop.f32.mrf.mxu0 }
 0x150   : > { %v594_v51 = vadd.f32 %v580_v49, %v484_v48 }
 0x151   : > { %v1341_v52 = vpop.f32.mrf.mxu0 }
 0x152   : > { %v604_v54 = vadd.f32 %v1100_v50, %v594_v51 }
 0x153   : > { %v585_v55 = vpop.f32.mrf.mxu0 }
 0x154   : > { %v595_v56 = vadd.f32 %v585_v55, %v489_v53  ;;  %v607_v59 = vmax.f32 %v604_v54, 0.0 }
 0x155   : > { %v1344_v57 = vpop.f32.mrf.mxu0 }
 0x156   : > { %v605_v60 = vadd.f32 %v1100_v50, %v595_v56  ;;  %v612_v5 = vrot.slane %v607_v59, 2 }
 0x157   : > { %v590_v61 = vpop.f32.mrf.mxu0 }
 0x158   : > { %v608_v63 = vmax.f32 %v605_v60, 0.0  ;;  %v596_v2 = vadd.f32 %v590_v61, %v494_v58 }
 0x159   : > { %v1347_v4 = vpop.f32.mrf.mxu0 }
 0x15a   : > { %v2014_v6 = vrot.slane %v608_v63, 2  ;;  %v606_v7 = vadd.f32 %v1100_v50, %v596_v2  ;;  %v619_v11 = vrot.slane %v608_v63, 6  ;;  %v647_v14 = vrot.slane %v608_v63, 1 }
 0x15c   : > { %v609_v8 = vmax.f32 %v606_v7, 0.0  ;;  %v616_v9 = vsel %vm300_vm2, %v612_v5, %v2014_v6 }
 0x15d   : > { %v2021_v10 = vsel %vm625_vm3, %v616_v9, %v607_v59 }
 0x15e   : > { %v620_v12 = vrot.slane %v609_v8, 6  ;;  %v646_v13 = vrot.slane %v2021_v10, 1  ;;  %1422 = vmatmul.mubr.f32.vlgmr.msra.gmra.mxu0 %v2021_v10  ;;  %v652_v37 = vrot.slane %v2021_v10, 2 }
 0x15f   : > { %1424 = vmatprep.mubr.msk.f32.mxu0 %vm1722_vm0, %v1721_v0 }
 0x160   : > { %v622_v16 = vsel %vm621_vm4, %v619_v11, %v620_v12  ;;  %v650_v17 = vsel %vm293_vm1, %v646_v13, %v647_v14  ;;  %v656_v39 = vsel %vm300_vm2, %v652_v37, %v2014_v6 }
 0x161   : > { %v2029_v18 = vsel %vm639_vm5, %v622_v16, %v609_v8  ;;  %1381 = vmatmul.mubr.f32.vlgmr.msra.gmra.mxu1 %v650_v17 }
 0x162   : > { %1431 = vmatpush3.msra.mxu1 %v865_v15  ;;  %1425 = vmatmul.mubr.f32.gmra.mxu0 %v608_v63  ;;  %v648_v20 = vrot.slane %v2029_v18, 1  ;;  %v654_v40 = vrot.slane %v2029_v18, 2 }
 0x163   : > { %1432 = vmatprep.subr.mxu1 %v1721_v0  ;;  %1383 = vmatprep.mubr.msk.f32.mxu1 %vm1722_vm0, %v1721_v0 }
 0x164   : > { %1433 = vmatpush3.msra.mxu1 %v864_v19  ;;  %v649_v22 = vsel %vm293_vm1, %v647_v14, %v648_v20  ;;  %1427 = vmatprep.mubr.msk.f32.mxu0 %vm1722_vm0, %v1721_v0  ;;  %v651_v25 = vsel %vm293_vm1, %v648_v20, %v646_v13  ;;  %v655_v41 = vsel %vm300_vm2, %v2014_v6, %v654_v40 }
 0x165   : > { %1434 = vmatprep.subr.mxu1 %v1721_v0  ;;  %1384 = vmatmul.mubr.f32.gmra.mxu1 %v649_v22  ;;  %v657_v42 = vsel %vm300_vm2, %v654_v40, %v652_v37 }
 0x166   : > { %1435 = vmatpush3.msra.mxu1 %v863_v21  ;;  %1428 = vmatmul.mubr.f32.gmra.mxu0 %v2029_v18 }
 0x167   : > { %1436 = vmatprep.subr.mxu1 %v1721_v0  ;;  %1386 = vmatprep.mubr.msk.f32.mxu1 %vm1722_vm0, %v1721_v0 }
 0x168   : > { %1437 = vmatpush3.msra.mxu1 %v862_v23 }
 0x169   : > { %1438 = vmatprep.subr.mxu1 %v1721_v0  ;;  %1387 = vmatmul.mubr.f32.gmra.mxu1 %v651_v25 }
 0x16a   : > { %1439 = vmatpush3.msra.mxu1 %v861_v24  ;;  %1462 = vmatprep.mubr.msk.f32.mxu1 %vm1722_vm0, %v1721_v0 }
 0x16b   : > { %1440 = vmatprep.subr.mxu1 %v1721_v0 }
 0x16c   : > { %1441 = vmatpush3.msra.mxu1 %v860_v26 }
 0x16d   : > { %1442 = vmatprep.subr.mxu1 %v1721_v0 }
 0x16e   : > { %1443 = vmatpush3.msra.mxu1 %v859_v27 }
 0x16f   : > { %1444 = vmatprep.subr.mxu1 %v1721_v0 }
 0x170   : > { %1445 = vmatpush3.msra.mxu1 %v858_v28 }
 0x171   : > { %1446 = vmatprep.subr.mxu1 %v1721_v0 }
 0x172   : > { %1447 = vmatpush3.msra.mxu1 %v857_v29 }
 0x173   : > { %1448 = vmatprep.subr.mxu1 %v1721_v0 }
 0x174   : > { %1449 = vmatpush3.msra.mxu1 %v856_v31 }
 0x175   : > { %1450 = vmatprep.subr.mxu1 %v1721_v0 }
 0x176   : > { %1451 = vmatpush3.msra.mxu1 %v855_v32 }
 0x177   : > { %1452 = vmatprep.subr.mxu1 %v1721_v0 }
 0x178   : > { %1453 = vmatpush3.msra.mxu1 %v854_v33 }
 0x179   : > { %1454 = vmatprep.subr.mxu1 %v1721_v0 }
 0x17a   : > { %1455 = vmatpush3.msra.mxu1 %v853_v34 }
 0x17b   : > { %1456 = vmatprep.subr.mxu1 %v1721_v0 }
 0x17c   : > { %1457 = vmatpush3.msra.mxu1 %v852_v35 }
 0x17d   : > { %1458 = vmatprep.subr.mxu1 %v1721_v0 }
 0x17e   : > { %1459 = vmatpush3.msra.mxu1 %v851_v36 }
 0x17f   : > { %1460 = vmatprep.subr.mxu1 %v1721_v0 }
 0x180   : > { %1461 = vmatpush3.msra.mxu1 %v850_v38 }
 0x181   : > { %1463 = vmatmul.mubr.f32.vlgmr.msra.gmra.mxu1 %v656_v39 }
 0x182   : > { %1465 = vmatprep.mubr.msk.f32.mxu1 %vm1722_vm0, %v1721_v0 }
 0x185   : > { %1466 = vmatmul.mubr.f32.gmra.mxu1 %v655_v41 }
 0x186   : > { %1468 = vmatprep.mubr.msk.f32.mxu1 %vm1722_vm0, %v1721_v0 }
 0x189   : > { %1469 = vmatmul.mubr.f32.gmra.mxu1 %v657_v42 }
 0x21e   : > { %v836_v43 = vpop.f32.mrf.mxu0 }
 0x220   : > { %v1423_v44 = vpop.f32.mrf.mxu0 }
 0x221   : > { %v757_v45 = vpop.f32.mrf.mxu1 }
 0x222   : > { %v841_v46 = vpop.f32.mrf.mxu0  ;;  %v837_v55 = vadd.f32 %v836_v43, %v757_v45 }
 0x223   : > { %v1382_v47 = vpop.f32.mrf.mxu1 }
 0x224   : > { %v1426_v48 = vpop.f32.mrf.mxu0 }
 0x225   : > { %v762_v49 = vpop.f32.mrf.mxu1 }
 0x226   : > { %v846_v50 = vpop.f32.mrf.mxu0  ;;  %v842_v58 = vadd.f32 %v841_v46, %v762_v49 }
 0x227   : > { %v1385_v51 = vpop.f32.mrf.mxu1 }
 0x228   : > { %v1429_v52 = vpop.f32.mrf.mxu0 }
 0x229   : > { %v767_v53 = vpop.f32.mrf.mxu1 }
 0x22b   : > { %v1388_v54 = vpop.f32.mrf.mxu1 }
 0x241   : > { %v932_v0 = vpop.f32.mrf.mxu1 }
 0x242   : > { %v945_v56 = vadd.f32 %v932_v0, %v837_v55 }
 0x243   : > { %v1464_v57 = vpop.f32.mrf.mxu1 }
 0x244   : > { %v954_v59 = vadd.f32 %v1101_v30, %v945_v56 }
 0x245   : > { %v937_v60 = vpop.f32.mrf.mxu1 }
 0x246   : > { %v956_v61 = vmul.f32 0.5, %v954_v59  ;;  %v946_v63 = vadd.f32 %v937_v60, %v842_v58 }
 0x247   : > { %v1467_v2 = vpop.f32.mrf.mxu1 }
 0x248   : > { %v958_v3 = vadd.f32 %v956_v61, %v1960_v62  ;;  %v955_v4 = vadd.f32 %v1101_v30, %v946_v63 }
 0x249   : > { %v942_v5 = vpop.f32.mrf.mxu1 }
 0x24a   : > { %960 = vst [vmem:[%s1868_s11] sm:$0xff] %v958_v3  ;;  %v957_v6 = vmul.f32 0.5, %v955_v4 }
 0x24b   : > { %v1470_v7 = vpop.f32.mrf.mxu1 }
 0x24c   : > { %v959_v8 = vadd.f32 %v957_v6, %v1970_v1 }
 0x24e   : > { %961 = vst [vmem:[%s1868_s11 + $0x8] sm:$0xff] %v959_v8 }
 0x24f   : > { %1641 = shalt.err (!%p1638_p11)
}
 0x250   : > { %s1642_s9 = scalar_lea.hbm %s2084_s8, 256  ;;  %s1646_s12 = scalar_lea.hbm %s2142_s5, 512 }
 0x251   : > { %p1643_p13 = scmp.ne.s32.totalorder %s2084_s8, %s1642_s9  ;;  %p1647_p7 = scmp.lt.s32.totalorder %s2084_s8, %s2142_s5 }
 0x252   : > { %p1648_p9 = scmp.lt.s32.totalorder %s1646_s12, %s1642_s9 }
 0x253   : > { %p1644_p0 = pnand %p1643_p13, %p2149_p2 }
 0x254   : > { %p1649_p12 = por %p1648_p9, %p1647_p7 }
 0x255   : > { %p1645_p6 = pneg %p1644_p0 }
 0x257   : > { %p1650_p1 = pnand %p1649_p12, %p1645_p6 }
 0x259   : > { %1653 = shalt.err (!%p1650_p1)
}
 0x25a   : > { %s1724_s15 = smov 128   ;;  %s1725_s17 = smov 8  }
 0x25b   : > { %1479 = dma.vmem_to_hbm [thread:$0]  (%p2149_p2), %s2086_s16, 256, %s2084_s8, %s2092_s21, %s1724_s15, %s1724_s15, %s1725_s17  }
 0x25c PF: > { %p1496_p5 = scmp.ge.s32.totalorder %s1714_s23, 2  ;;  %s993_s24 = sand.u32 1, %s1694_s18  }
 0x25d   : > { %p2150_p3 = scmp.ne.s32.totalorder %s2145_s30, 0  ;;  %s994_s25 = scalar_lea.sflag [#allocation6], %s993_s24 }
 0x25f   : > { %p1489_p4 = pnand %p1496_p5, %p2150_p3 }
 0x261   : > { %p1490_p8 = pneg %p1489_p4 }
 0x263   : > { %1689 = dma.done.wait (%p1490_p8), %s994_s25, 256  }
 0x264   : > { %1691 = vsyncadd (%p1490_p8), %s994_s25, 4294967040  ;;  %s20_s23 = sadd.s32 1, %s1714_s23   ;;  %s2151_s18 = smov %s1698_s19 }
 0x265   : > { %p17_p10 = scmp.ge.s32.totalorder %s20_s23, 4   ;;  %s2152_s19 = smov %s1702_s20 }
 0x266   : > { %s2153_s20 = smov %s1809_s6  ;;  %s2154_s21 = smov %s1710_s22 }
 0x267   : > { %s2155_s22 = smov %s2157_s26  ;;  %19 = sbr.rel (!%p17_p10) target bundleno = 6 (0x6), region = 104 }
 0x26c   :  { %999 = vsyncpa [#allocation5], 1 }
 0x26d   :  { %1001 = vsyncpa [#allocation5 + $0x1], 1 }
 0x26e   :  { %1002 = vsyncpa [#allocation8], 1 }
 0x26f   :  { %1003 = vsyncpa [#allocation6], 1 }
 0x270   :  { %1005 = vsyncpa [#allocation6 + $0x1], 1 }
 0x271   :  { %1006 = vsyncmov [#allocation3] }
 0x274   :  { %s1007_s28 = vpop.sfrf %1006 }
 0x275   :  { %p1107_p2 = scmp.ne.s32.totalorder %s1007_s28, 0 }
 0x277   :  { %1011 = shalt.err (%p1107_p2)  }
 0x278   :  { %1013 = vsyncmov [#allocation3 + $0x1] }
 0x27b   :  { %s1014_s30 = vpop.sfrf %1013 }
 0x27c   :  { %p1108_p11 = scmp.ne.s32.totalorder %s1014_s30, 0 }
 0x27e   :  { %1018 = shalt.err (%p1108_p11)  }

</bundles_post_ra>
